<compile_context>
chip_gen: v6e
topology: v6e:2x2x1
jax: 0.10.0
libtpu: 0.0.40
codegen_flags: <defaults>
</compile_context>

<pallas_src>
import math

import jax
import jax.numpy as jnp
from jax import lax
from jax.experimental import pallas as pl
from jax.experimental.pallas import tpu as pltpu

# ----------------------- small Llama-like config -----------------------
BATCH = 2
SEQ = 8
HIDDEN = 32
NUM_HEADS = 4
NUM_KV_HEADS = 2
HEAD_DIM = HIDDEN // NUM_HEADS          # 8
INTERMEDIATE = 64
RMS_EPS = 1e-6
ROPE_THETA = 10000.0
DTYPE = jnp.bfloat16

Q_DIM = NUM_HEADS * HEAD_DIM            # 32
KV_DIM = NUM_KV_HEADS * HEAD_DIM        # 16
REP = NUM_HEADS // NUM_KV_HEADS         # query heads per KV head


# ------------------------- fused decoder kernel -------------------------
def _decoder_layer_kernel(x_ref, wqkv_ref, wo_ref, wgu_ref, wd_ref,
                          ln_ref, rope_ref, bias_ref, o_ref):
    # Single grid step; x_ref is (B*S, H) bf16.  Residuals stay in VMEM (f32).
    x = x_ref[...].astype(jnp.float32)                       # residual #1

    # ---- input RMSNorm (all f32 elementwise) ----
    var = jnp.mean(x * x, axis=-1, keepdims=True)
    xn = x * lax.rsqrt(var + RMS_EPS) * ln_ref[0:1, :]
    xn_b = xn.astype(DTYPE)                                  # cast only at MXU input

    # ---- one wide fused projection: [q | k | v | rot_half(q) | rot_half(k)] ----
    qkv = jnp.dot(xn_b, wqkv_ref[...], preferred_element_type=jnp.float32)  # (R, 112)
    q = qkv[:, :Q_DIM]
    k = qkv[:, Q_DIM:Q_DIM + KV_DIM]
    v = qkv[:, Q_DIM + KV_DIM:Q_DIM + 2 * KV_DIM]
    qr = qkv[:, Q_DIM + 2 * KV_DIM:2 * Q_DIM + 2 * KV_DIM]   # rotate_half(q), from weights
    kr = qkv[:, 2 * Q_DIM + 2 * KV_DIM:]                     # rotate_half(k)

    # ---- RoPE: pure element-wise (rotation folded into weights, scale folded
    #      into the q cos/sin tables).  No extra MXU launches, no lane shuffles.
    cos_q = rope_ref[:, :Q_DIM]
    sin_q = rope_ref[:, Q_DIM:2 * Q_DIM]
    cos_k = rope_ref[:, 2 * Q_DIM:2 * Q_DIM + KV_DIM]
    sin_k = rope_ref[:, 2 * Q_DIM + KV_DIM:]
    q = q * cos_q + qr * sin_q                               # already * head_dim^-0.5
    k = k * cos_k + kr * sin_k

    # ---- batched causal GQA attention over a head axis (2 MXU calls) ----
    # Stack the per-head lane slices once; KV heads are re-used per query head
    # in-register (no repeated HBM tensor).
    qh = jnp.stack([q[:, h * HEAD_DIM:(h + 1) * HEAD_DIM]
                    for h in range(NUM_HEADS)], axis=0).astype(DTYPE)      # (nH, R, D)
    kh = jnp.stack([k[:, (h // REP) * HEAD_DIM:((h // REP) + 1) * HEAD_DIM]
                    for h in range(NUM_HEADS)], axis=0).astype(DTYPE)      # (nH, R, D)
    vh = jnp.stack([v[:, (h // REP) * HEAD_DIM:((h // REP) + 1) * HEAD_DIM]
                    for h in range(NUM_HEADS)], axis=0).astype(DTYPE)      # (nH, R, D)

    s = jnp.einsum('hqd,hkd->hqk', qh, kh,
                   preferred_element_type=jnp.float32)                     # (nH, R, R)
    s = s + bias_ref[...]            # block-diagonal causal bias (0 / -1e30), finite
    m = jnp.max(s, axis=-1, keepdims=True)
    p = jnp.exp(s - m)
    l = jnp.sum(p, axis=-1, keepdims=True)
    # Diagonal is never masked -> l >= 1, approx reciprocal (EUP) is safe here.
    p = p * pl.reciprocal(l, approx=True)
    oh = jnp.einsum('hqk,hkd->hqd', p.astype(DTYPE), vh,
                    preferred_element_type=jnp.float32)                    # (nH, R, D)
    attn = jnp.concatenate([oh[h] for h in range(NUM_HEADS)], axis=-1)     # (R, nH*D) f32

    # ---- o_proj + residual (residual add in f32, never leaves VMEM) ----
    hs = jnp.dot(attn.astype(DTYPE), wo_ref[...],
                 preferred_element_type=jnp.float32) + x

    # ---- post-attention RMSNorm + fused gate/up matmul + SiLU + down + residual ----
    var2 = jnp.mean(hs * hs, axis=-1, keepdims=True)
    hn = (hs * lax.rsqrt(var2 + RMS_EPS) * ln_ref[1:2, :]).astype(DTYPE)
    gu = jnp.dot(hn, wgu_ref[...], preferred_element_type=jnp.float32)     # (R, 2I)
    gate = gu[:, :INTERMEDIATE]
    up = gu[:, INTERMEDIATE:]
    act = (gate / (1.0 + jnp.exp(-gate))) * up                             # SiLU in f32
    down = jnp.dot(act.astype(DTYPE), wd_ref[...],
                   preferred_element_type=jnp.float32)
    o_ref[...] = (down + hs).astype(o_ref.dtype)


# ------------------------------ wrapper ----------------------------------
def _full_spec(arr):
    """Whole-array VMEM block (no grid -> 0-arg index map)."""
    ndim = arr.ndim
    return pl.BlockSpec(arr.shape, lambda: (0,) * ndim)


def decoder_layer_forward(hidden_states, prep):
    """Jitted per-call path: only a leading reshape + one pallas_call."""
    B, S, H = hidden_states.shape
    x2 = hidden_states.reshape(B * S, H)                    # leading-dim fold, free
    args = (x2, prep['w_qkv'], prep['w_o'], prep['w_gu'], prep['w_d'],
            prep['ln'], prep['rope'], prep['bias'])
    out = pl.pallas_call(
        _decoder_layer_kernel,
        out_shape=jax.ShapeDtypeStruct((B * S, H), hidden_states.dtype),
        in_specs=[_full_spec(a) for a in args],
        out_specs=pl.BlockSpec((B * S, H), lambda: (0, 0)),
        compiler_params=pltpu.CompilerParams(vmem_limit_bytes=32 * 1024 * 1024),
    )(*args)
    return out.reshape(B, S, H)


# ----------------- one-time (model-load-time) preparation -----------------
def _rotate_half_cols(w):
    """Given W (in, n_heads*D), return W' with x @ W' == rotate_half(x @ W)."""
    in_dim, out_dim = w.shape
    n_heads = out_dim // HEAD_DIM
    half = HEAD_DIM // 2
    w3 = w.reshape(in_dim, n_heads, HEAD_DIM)
    first, second = w3[..., :half], w3[..., half:]
    return jnp.concatenate([-second, first], axis=-1).reshape(in_dim, out_dim)


def prepare_layer_inputs(params, position_ids, batch, seq):
    """Fuse/transpose weights and build RoPE + mask tables ONCE (not per call)."""
    wq_t = params['q_proj'].T                                # (H, Q_DIM)
    wk_t = params['k_proj'].T                                # (H, KV_DIM)
    wv_t = params['v_proj'].T                                # (H, KV_DIM)
    # one wide fused projection: [q | k | v | rot_half(q) | rot_half(k)]
    w_qkv = jnp.concatenate(
        [wq_t, wk_t, wv_t, _rotate_half_cols(wq_t), _rotate_half_cols(wk_t)],
        axis=1).astype(DTYPE)                                # (H, 2Q+3KV)
    w_o = params['o_proj'].T.astype(DTYPE)                   # (Q_DIM, H)
    w_gu = jnp.concatenate(
        [params['gate_proj'].T, params['up_proj'].T], axis=1).astype(DTYPE)  # (H, 2I)
    w_d = params['down_proj'].T.astype(DTYPE)                # (I, H)
    ln = jnp.stack([params['input_layernorm'],
                    params['post_attention_layernorm']]).astype(jnp.float32)  # (2, H)

    # RoPE tables over folded rows (batch-major, same positions per batch).
    rows = batch * seq
    pos = jnp.tile(position_ids.astype(jnp.float32), (batch,))              # (R,)
    inv_freq = 1.0 / (ROPE_THETA ** (jnp.arange(0, HEAD_DIM, 2,
                                                 dtype=jnp.float32) / HEAD_DIM))
    freqs = pos[:, None] * inv_freq[None, :]                                # (R, D/2)
    emb = jnp.concatenate([freqs, freqs], axis=-1)                          # (R, D)
    cos = jnp.cos(emb)
    sin = jnp.sin(emb)
    scale = HEAD_DIM ** -0.5                                 # folded into q tables
    rope = jnp.concatenate(
        [jnp.tile(cos, (1, NUM_HEADS)) * scale,
         jnp.tile(sin, (1, NUM_HEADS)) * scale,
         jnp.tile(cos, (1, NUM_KV_HEADS)),
         jnp.tile(sin, (1, NUM_KV_HEADS))], axis=1).astype(jnp.float32)     # (R, 96)

    # Block-diagonal causal additive bias over the folded (B*S) rows.
    r = jnp.arange(rows)
    same_batch = (r[:, None] // seq) == (r[None, :] // seq)
    causal = (r[:, None] % seq) >= (r[None, :] % seq)
    bias = jnp.where(same_batch & causal, 0.0, -1e30).astype(jnp.float32)   # (R, R)

    return dict(w_qkv=w_qkv, w_o=w_o, w_gu=w_gu, w_d=w_d,
                ln=ln, rope=rope, bias=bias)


# ------------------------------ params -----------------------------------
def make_params(key):
    """Synthesize the flat 'reconstructed' bf16 buffer and tensor_split it,
    mirroring DFloat11LlamaDecoderLayer.forward's weight reconstruction."""
    shapes = {
        'q_proj':    (NUM_HEADS * HEAD_DIM, HIDDEN),
        'k_proj':    (NUM_KV_HEADS * HEAD_DIM, HIDDEN),
        'v_proj':    (NUM_KV_HEADS * HEAD_DIM, HIDDEN),
        'o_proj':    (HIDDEN, NUM_HEADS * HEAD_DIM),
        'up_proj':   (INTERMEDIATE, HIDDEN),
        'gate_proj': (INTERMEDIATE, HIDDEN),
        'down_proj': (HIDDEN, INTERMEDIATE),
    }
    # order in the flat buffer matches the module: q, k, v, o, up, gate, down
    order = ['q_proj', 'k_proj', 'v_proj', 'o_proj',
             'up_proj', 'gate_proj', 'down_proj']
    sizes = [shapes[n][0] * shapes[n][1] for n in order]
    n_elements = sum(sizes)

    key, sub = jax.random.split(key)
    reconstructed = (0.02 * jax.random.normal(
        sub, (n_elements,), dtype=jnp.float32)).astype(DTYPE)

    split_positions = []
    acc = 0
    for s in sizes[:-1]:
        acc += s
        split_positions.append(acc)
    pieces = jnp.split(reconstructed, split_positions)

    params = {}
    for name, piece in zip(order, pieces):
        params[name] = piece.reshape(shapes[name])
    params['input_layernorm'] = jnp.ones((HIDDEN,), dtype=DTYPE)
    params['post_attention_layernorm'] = jnp.ones((HIDDEN,), dtype=DTYPE)
    return params


if __name__ == "__main__":
    key = jax.random.PRNGKey(0)
    key, k_h = jax.random.split(key)
    hidden_states = jax.random.normal(
        k_h, (BATCH, SEQ, HIDDEN), dtype=jnp.float32).astype(DTYPE)
    position_ids = jnp.arange(SEQ, dtype=jnp.int32)
    params = make_params(key)

    # One-time (model-load-time) weight fusion + table precompute.
    prep = prepare_layer_inputs(params, position_ids, BATCH, SEQ)
    prep = jax.tree_util.tree_map(jax.block_until_ready, prep)

    fwd = jax.jit(decoder_layer_forward)
    out = fwd(hidden_states, prep)
    jax.block_until_ready(out)

    assert out.shape == (BATCH, SEQ, HIDDEN)
    assert out.dtype == DTYPE
    assert bool(jnp.all(jnp.isfinite(out.astype(jnp.float32))))
    print("KERNEL_OK")
</pallas_src>

<mosaic_0001>
module attributes {stable_mosaic.version = 11 : i64} {
  func.func @_decoder_layer_kernel(%arg0: memref<16x32xbf16, #tpu.memory_space<vmem>>, %arg1: memref<32x112xbf16, #tpu.memory_space<vmem>>, %arg2: memref<32x32xbf16, #tpu.memory_space<vmem>>, %arg3: memref<32x128xbf16, #tpu.memory_space<vmem>>, %arg4: memref<64x32xbf16, #tpu.memory_space<vmem>>, %arg5: memref<2x32xf32, #tpu.memory_space<vmem>>, %arg6: memref<16x96xf32, #tpu.memory_space<vmem>>, %arg7: memref<16x16xf32, #tpu.memory_space<vmem>>, %arg8: memref<16x32xbf16, #tpu.memory_space<vmem>>) attributes {dimension_semantics = [], scalar_prefetch = 0 : i64, scratch_operands = 0 : i64, tpu.core_type = #tpu.core_type<tc>} {
    %c0 = arith.constant 0 : index
    %c0_0 = arith.constant 0 : index
    %0 = vector.load %arg0[%c0, %c0_0] : memref<16x32xbf16, #tpu.memory_space<vmem>>, vector<16x32xbf16>
    %1 = arith.extf %0 : vector<16x32xbf16> to vector<16x32xf32>
    %2 = arith.mulf %1, %1 : vector<16x32xf32>
    %cst = arith.constant dense<0.000000e+00> : vector<16xf32>
    %3 = vector.multi_reduction <add>, %2, %cst [1] : vector<16x32xf32> to vector<16xf32>
    %4 = vector.shape_cast %3 : vector<16xf32> to vector<16x1xf32>
    %cst_1 = arith.constant 3.200000e+01 : f32
    %5 = vector.broadcast %cst_1 : f32 to vector<16x1xf32>
    %6 = arith.divf %4, %5 : vector<16x1xf32>
    %cst_2 = arith.constant 9.99999997E-7 : f32
    %7 = vector.broadcast %cst_2 : f32 to vector<16x1xf32>
    %8 = arith.addf %6, %7 : vector<16x1xf32>
    %9 = math.rsqrt %8 : vector<16x1xf32>
    %10 = vector.broadcast %9 : vector<16x1xf32> to vector<16x32xf32>
    %11 = arith.mulf %1, %10 : vector<16x32xf32>
    %c0_3 = arith.constant 0 : index
    %c0_4 = arith.constant 0 : index
    %12 = vector.load %arg5[%c0_3, %c0_4] : memref<2x32xf32, #tpu.memory_space<vmem>>, vector<1x32xf32>
    %13 = vector.broadcast %12 : vector<1x32xf32> to vector<16x32xf32>
    %14 = arith.mulf %11, %13 : vector<16x32xf32>
    %15 = arith.truncf %14 : vector<16x32xf32> to vector<16x32xbf16>
    %c0_5 = arith.constant 0 : index
    %c0_6 = arith.constant 0 : index
    %16 = vector.load %arg1[%c0_5, %c0_6] : memref<32x112xbf16, #tpu.memory_space<vmem>>, vector<32x112xbf16>
    %cst_7 = arith.constant dense<0.000000e+00> : vector<16x112xf32>
    %17 = tpu.matmul %15, %16, %cst_7 {dimension_numbers = #tpu.dot_dimension_numbers<[1], [0], [0], [1], [0, 0, 1, 1], [], []>} : vector<16x32xbf16>, vector<32x112xbf16>, vector<16x112xf32> -> vector<16x112xf32>
    %18 = vector.extract_strided_slice %17 {offsets = [0, 0], sizes = [16, 32], strides = [1, 1]} : vector<16x112xf32> to vector<16x32xf32>
    %19 = vector.extract_strided_slice %17 {offsets = [0, 32], sizes = [16, 16], strides = [1, 1]} : vector<16x112xf32> to vector<16x16xf32>
    %20 = vector.extract_strided_slice %17 {offsets = [0, 48], sizes = [16, 16], strides = [1, 1]} : vector<16x112xf32> to vector<16x16xf32>
    %21 = vector.extract_strided_slice %17 {offsets = [0, 64], sizes = [16, 32], strides = [1, 1]} : vector<16x112xf32> to vector<16x32xf32>
    %22 = vector.extract_strided_slice %17 {offsets = [0, 96], sizes = [16, 16], strides = [1, 1]} : vector<16x112xf32> to vector<16x16xf32>
    %c0_8 = arith.constant 0 : index
    %c0_9 = arith.constant 0 : index
    %23 = vector.load %arg6[%c0_8, %c0_9] : memref<16x96xf32, #tpu.memory_space<vmem>>, vector<16x32xf32>
    %c0_10 = arith.constant 0 : index
    %c32 = arith.constant 32 : index
    %24 = vector.load %arg6[%c0_10, %c32] : memref<16x96xf32, #tpu.memory_space<vmem>>, vector<16x32xf32>
    %c0_11 = arith.constant 0 : index
    %c64 = arith.constant 64 : index
    %25 = vector.load %arg6[%c0_11, %c64] : memref<16x96xf32, #tpu.memory_space<vmem>>, vector<16x16xf32>
    %c0_12 = arith.constant 0 : index
    %c80 = arith.constant 80 : index
    %26 = vector.load %arg6[%c0_12, %c80] : memref<16x96xf32, #tpu.memory_space<vmem>>, vector<16x16xf32>
    %27 = arith.mulf %18, %23 : vector<16x32xf32>
    %28 = arith.mulf %21, %24 : vector<16x32xf32>
    %29 = arith.addf %27, %28 : vector<16x32xf32>
    %30 = arith.mulf %19, %25 : vector<16x16xf32>
    %31 = arith.mulf %22, %26 : vector<16x16xf32>
    %32 = arith.addf %30, %31 : vector<16x16xf32>
    %33 = vector.extract_strided_slice %29 {offsets = [0, 0], sizes = [16, 8], strides = [1, 1]} : vector<16x32xf32> to vector<16x8xf32>
    %34 = vector.extract_strided_slice %29 {offsets = [0, 8], sizes = [16, 8], strides = [1, 1]} : vector<16x32xf32> to vector<16x8xf32>
    %35 = vector.extract_strided_slice %29 {offsets = [0, 16], sizes = [16, 8], strides = [1, 1]} : vector<16x32xf32> to vector<16x8xf32>
    %36 = vector.extract_strided_slice %29 {offsets = [0, 24], sizes = [16, 8], strides = [1, 1]} : vector<16x32xf32> to vector<16x8xf32>
    %37 = vector.shape_cast %33 : vector<16x8xf32> to vector<1x16x8xf32>
    %38 = vector.shape_cast %34 : vector<16x8xf32> to vector<1x16x8xf32>
    %39 = vector.shape_cast %35 : vector<16x8xf32> to vector<1x16x8xf32>
    %40 = vector.shape_cast %36 : vector<16x8xf32> to vector<1x16x8xf32>
    %41 = tpu.concatenate %37, %38, %39, %40 in 0 : vector<1x16x8xf32>, vector<1x16x8xf32>, vector<1x16x8xf32>, vector<1x16x8xf32> -> vector<4x16x8xf32>
    %42 = arith.truncf %41 : vector<4x16x8xf32> to vector<4x16x8xbf16>
    %43 = vector.extract_strided_slice %32 {offsets = [0, 0], sizes = [16, 8], strides = [1, 1]} : vector<16x16xf32> to vector<16x8xf32>
    %44 = vector.extract_strided_slice %32 {offsets = [0, 0], sizes = [16, 8], strides = [1, 1]} : vector<16x16xf32> to vector<16x8xf32>
    %45 = vector.extract_strided_slice %32 {offsets = [0, 8], sizes = [16, 8], strides = [1, 1]} : vector<16x16xf32> to vector<16x8xf32>
    %46 = vector.extract_strided_slice %32 {offsets = [0, 8], sizes = [16, 8], strides = [1, 1]} : vector<16x16xf32> to vector<16x8xf32>
    %47 = vector.shape_cast %43 : vector<16x8xf32> to vector<1x16x8xf32>
    %48 = vector.shape_cast %44 : vector<16x8xf32> to vector<1x16x8xf32>
    %49 = vector.shape_cast %45 : vector<16x8xf32> to vector<1x16x8xf32>
    %50 = vector.shape_cast %46 : vector<16x8xf32> to vector<1x16x8xf32>
    %51 = tpu.concatenate %47, %48, %49, %50 in 0 : vector<1x16x8xf32>, vector<1x16x8xf32>, vector<1x16x8xf32>, vector<1x16x8xf32> -> vector<4x16x8xf32>
    %52 = arith.truncf %51 : vector<4x16x8xf32> to vector<4x16x8xbf16>
    %53 = vector.extract_strided_slice %20 {offsets = [0, 0], sizes = [16, 8], strides = [1, 1]} : vector<16x16xf32> to vector<16x8xf32>
    %54 = vector.extract_strided_slice %20 {offsets = [0, 0], sizes = [16, 8], strides = [1, 1]} : vector<16x16xf32> to vector<16x8xf32>
    %55 = vector.extract_strided_slice %20 {offsets = [0, 8], sizes = [16, 8], strides = [1, 1]} : vector<16x16xf32> to vector<16x8xf32>
    %56 = vector.extract_strided_slice %20 {offsets = [0, 8], sizes = [16, 8], strides = [1, 1]} : vector<16x16xf32> to vector<16x8xf32>
    %57 = vector.shape_cast %53 : vector<16x8xf32> to vector<1x16x8xf32>
    %58 = vector.shape_cast %54 : vector<16x8xf32> to vector<1x16x8xf32>
    %59 = vector.shape_cast %55 : vector<16x8xf32> to vector<1x16x8xf32>
    %60 = vector.shape_cast %56 : vector<16x8xf32> to vector<1x16x8xf32>
    %61 = tpu.concatenate %57, %58, %59, %60 in 0 : vector<1x16x8xf32>, vector<1x16x8xf32>, vector<1x16x8xf32>, vector<1x16x8xf32> -> vector<4x16x8xf32>
    %62 = arith.truncf %61 : vector<4x16x8xf32> to vector<4x16x8xbf16>
    "tpu.trace_start"() <{level = 10 : i32, message = "hqd,hkd->hqk"}> : () -> ()
    %cst_13 = arith.constant dense<0.000000e+00> : vector<4x16x16xf32>
    %63 = tpu.matmul %42, %52, %cst_13 {dimension_numbers = #tpu.dot_dimension_numbers<[2], [2], [1], [1], [0, 0, 0, 1, 1, 1], [0], [0]>} : vector<4x16x8xbf16>, vector<4x16x8xbf16>, vector<4x16x16xf32> -> vector<4x16x16xf32>
    "tpu.trace_stop"() : () -> ()
    %c0_14 = arith.constant 0 : index
    %c0_15 = arith.constant 0 : index
    %64 = vector.load %arg7[%c0_14, %c0_15] : memref<16x16xf32, #tpu.memory_space<vmem>>, vector<16x16xf32>
    %65 = vector.shape_cast %64 : vector<16x16xf32> to vector<1x16x16xf32>
    %66 = vector.broadcast %65 : vector<1x16x16xf32> to vector<4x16x16xf32>
    %67 = arith.addf %63, %66 : vector<4x16x16xf32>
    %cst_16 = arith.constant dense<0xFF800000> : vector<4x16xf32>
    %68 = vector.multi_reduction <maximumf>, %67, %cst_16 [2] : vector<4x16x16xf32> to vector<4x16xf32>
    %69 = vector.shape_cast %68 : vector<4x16xf32> to vector<4x16x1xf32>
    %70 = vector.broadcast %69 : vector<4x16x1xf32> to vector<4x16x16xf32>
    %71 = arith.subf %67, %70 : vector<4x16x16xf32>
    %72 = math.exp %71 : vector<4x16x16xf32>
    %cst_17 = arith.constant dense<0.000000e+00> : vector<4x16xf32>
    %73 = vector.multi_reduction <add>, %72, %cst_17 [2] : vector<4x16x16xf32> to vector<4x16xf32>
    %74 = vector.shape_cast %73 : vector<4x16xf32> to vector<4x16x1xf32>
    %75 = tpu.reciprocal %74 {approx = true} : vector<4x16x1xf32> -> vector<4x16x1xf32>
    %76 = vector.broadcast %75 : vector<4x16x1xf32> to vector<4x16x16xf32>
    %77 = arith.mulf %72, %76 : vector<4x16x16xf32>
    %78 = arith.truncf %77 : vector<4x16x16xf32> to vector<4x16x16xbf16>
    "tpu.trace_start"() <{level = 10 : i32, message = "hqk,hkd->hqd"}> : () -> ()
    %cst_18 = arith.constant dense<0.000000e+00> : vector<4x16x8xf32>
    %79 = tpu.matmul %78, %62, %cst_18 {dimension_numbers = #tpu.dot_dimension_numbers<[2], [1], [1], [2], [0, 0, 0, 1, 1, 2], [0], [0]>} : vector<4x16x16xbf16>, vector<4x16x8xbf16>, vector<4x16x8xf32> -> vector<4x16x8xf32>
    "tpu.trace_stop"() : () -> ()
    %80 = vector.extract_strided_slice %79 {offsets = [0, 0, 0], sizes = [1, 16, 8], strides = [1, 1, 1]} : vector<4x16x8xf32> to vector<1x16x8xf32>
    %81 = vector.shape_cast %80 : vector<1x16x8xf32> to vector<16x8xf32>
    %82 = vector.extract_strided_slice %79 {offsets = [1, 0, 0], sizes = [1, 16, 8], strides = [1, 1, 1]} : vector<4x16x8xf32> to vector<1x16x8xf32>
    %83 = vector.shape_cast %82 : vector<1x16x8xf32> to vector<16x8xf32>
    %84 = vector.extract_strided_slice %79 {offsets = [2, 0, 0], sizes = [1, 16, 8], strides = [1, 1, 1]} : vector<4x16x8xf32> to vector<1x16x8xf32>
    %85 = vector.shape_cast %84 : vector<1x16x8xf32> to vector<16x8xf32>
    %86 = vector.extract_strided_slice %79 {offsets = [3, 0, 0], sizes = [1, 16, 8], strides = [1, 1, 1]} : vector<4x16x8xf32> to vector<1x16x8xf32>
    %87 = vector.shape_cast %86 : vector<1x16x8xf32> to vector<16x8xf32>
    %88 = tpu.concatenate %81, %83, %85, %87 in 1 : vector<16x8xf32>, vector<16x8xf32>, vector<16x8xf32>, vector<16x8xf32> -> vector<16x32xf32>
    %89 = arith.truncf %88 : vector<16x32xf32> to vector<16x32xbf16>
    %c0_19 = arith.constant 0 : index
    %c0_20 = arith.constant 0 : index
    %90 = vector.load %arg2[%c0_19, %c0_20] : memref<32x32xbf16, #tpu.memory_space<vmem>>, vector<32x32xbf16>
    %cst_21 = arith.constant dense<0.000000e+00> : vector<16x32xf32>
    %91 = tpu.matmul %89, %90, %cst_21 {dimension_numbers = #tpu.dot_dimension_numbers<[1], [0], [0], [1], [0, 0, 1, 1], [], []>} : vector<16x32xbf16>, vector<32x32xbf16>, vector<16x32xf32> -> vector<16x32xf32>
    %92 = arith.addf %91, %1 : vector<16x32xf32>
    %93 = arith.mulf %92, %92 : vector<16x32xf32>
    %cst_22 = arith.constant dense<0.000000e+00> : vector<16xf32>
    %94 = vector.multi_reduction <add>, %93, %cst_22 [1] : vector<16x32xf32> to vector<16xf32>
    %95 = vector.shape_cast %94 : vector<16xf32> to vector<16x1xf32>
    %cst_23 = arith.constant 3.200000e+01 : f32
    %96 = vector.broadcast %cst_23 : f32 to vector<16x1xf32>
    %97 = arith.divf %95, %96 : vector<16x1xf32>
    %cst_24 = arith.constant 9.99999997E-7 : f32
    %98 = vector.broadcast %cst_24 : f32 to vector<16x1xf32>
    %99 = arith.addf %97, %98 : vector<16x1xf32>
    %100 = math.rsqrt %99 : vector<16x1xf32>
    %101 = vector.broadcast %100 : vector<16x1xf32> to vector<16x32xf32>
    %102 = arith.mulf %92, %101 : vector<16x32xf32>
    %c1 = arith.constant 1 : index
    %c0_25 = arith.constant 0 : index
    %103 = vector.load %arg5[%c1, %c0_25] : memref<2x32xf32, #tpu.memory_space<vmem>>, vector<1x32xf32>
    %104 = vector.broadcast %103 : vector<1x32xf32> to vector<16x32xf32>
    %105 = arith.mulf %102, %104 : vector<16x32xf32>
    %106 = arith.truncf %105 : vector<16x32xf32> to vector<16x32xbf16>
    %c0_26 = arith.constant 0 : index
    %c0_27 = arith.constant 0 : index
    %107 = vector.load %arg3[%c0_26, %c0_27] : memref<32x128xbf16, #tpu.memory_space<vmem>>, vector<32x128xbf16>
    %cst_28 = arith.constant dense<0.000000e+00> : vector<16x128xf32>
    %108 = tpu.matmul %106, %107, %cst_28 {dimension_numbers = #tpu.dot_dimension_numbers<[1], [0], [0], [1], [0, 0, 1, 1], [], []>} : vector<16x32xbf16>, vector<32x128xbf16>, vector<16x128xf32> -> vector<16x128xf32>
    %109 = vector.extract_strided_slice %108 {offsets = [0, 0], sizes = [16, 64], strides = [1, 1]} : vector<16x128xf32> to vector<16x64xf32>
    %110 = vector.extract_strided_slice %108 {offsets = [0, 64], sizes = [16, 64], strides = [1, 1]} : vector<16x128xf32> to vector<16x64xf32>
    %cst_29 = arith.constant 0.000000e+00 : f32
    %111 = vector.broadcast %cst_29 : f32 to vector<16x64xf32>
    %112 = arith.subf %111, %109 : vector<16x64xf32>
    %113 = math.exp %112 : vector<16x64xf32>
    %cst_30 = arith.constant 1.000000e+00 : f32
    %114 = vector.broadcast %cst_30 : f32 to vector<16x64xf32>
    %115 = arith.addf %114, %113 : vector<16x64xf32>
    %116 = arith.divf %109, %115 : vector<16x64xf32>
    %117 = arith.mulf %116, %110 : vector<16x64xf32>
    %118 = arith.truncf %117 : vector<16x64xf32> to vector<16x64xbf16>
    %c0_31 = arith.constant 0 : index
    %c0_32 = arith.constant 0 : index
    %119 = vector.load %arg4[%c0_31, %c0_32] : memref<64x32xbf16, #tpu.memory_space<vmem>>, vector<64x32xbf16>
    %cst_33 = arith.constant dense<0.000000e+00> : vector<16x32xf32>
    %120 = tpu.matmul %118, %119, %cst_33 {dimension_numbers = #tpu.dot_dimension_numbers<[1], [0], [0], [1], [0, 0, 1, 1], [], []>} : vector<16x64xbf16>, vector<64x32xbf16>, vector<16x32xf32> -> vector<16x32xf32>
    %121 = arith.addf %120, %92 : vector<16x32xf32>
    %122 = arith.truncf %121 : vector<16x32xf32> to vector<16x32xbf16>
    %c0_34 = arith.constant 0 : index
    %c0_35 = arith.constant 0 : index
    %123 = vector.load %arg8[%c0_34, %c0_35] : memref<16x32xbf16, #tpu.memory_space<vmem>>, vector<16x32xbf16>
    tpu.vector_store %arg8[%c0_34, %c0_35], %122 {strides = array<i32>} : memref<16x32xbf16, #tpu.memory_space<vmem>>, vector<16x32xbf16>,
    return
  }
}

</mosaic_0001>

<bundles_post_ra>
// kernel: decoder_layer_forward.1
= control target key start
LH: loop header
LB: loop body
LE: loop exit
PB: predicated region body
PF: predicated region fallthrough
CT: control target
= control target key end

     0   :  { %13 = vsyncpa [#allocation3], 0  ;;  %s1646_s0 = inlined_call_operand.hbm [shape: bf16[16,32], index: 0, kind: input, shape index: {}]   ;;  %s1647_s1 = inlined_call_operand.vmem [shape: bf16[32,112], index: 1, kind: input, shape index: {}]   ;;  %s1648_s2 = inlined_call_operand.vmem [shape: bf16[32,32], index: 2, kind: input, shape index: {}]   ;;  %s1649_s3 = inlined_call_operand.vmem [shape: bf16[32,128], index: 3, kind: input, shape index: {}]   ;;  %s1650_s4 = inlined_call_operand.vmem [shape: bf16[64,32], index: 4, kind: input, shape index: {}]   ;;  %s1651_s5 = inlined_call_operand.vmem [shape: f32[2,32], index: 5, kind: input, shape index: {}]   ;;  %s1652_s6 = inlined_call_operand.hbm [shape: f32[16,96], index: 6, kind: input, shape index: {}]   ;;  %s1653_s7 = inlined_call_operand.hbm [shape: f32[16,16], index: 7, kind: input, shape index: {}]   ;;  %s1654_s8 = inlined_call_operand.hbm [shape: bf16[16,32], index: 8, kind: output, shape index: {}]  }
   0x1   :  { %14 = vsyncpa [#allocation6], 0 }
   0x2   :  { %15 = vsyncpa [#allocation4], 0  ;;  %s1377_s27 = smov [#allocation5]  }
   0x3   :  { %s43_s28 = sshll.u32 %s1377_s27, 4  ;;  %s44_s28 = int_to_ptr.vmem [resolvable:$true] %s43_s28 }
   0x4   :  { %s1299_s29 = scalar_lea.vmem %s44_s28, 256  ;;  %p1304_p1 = scmp.lt.s32.totalorder %s44_s28, %s44_s28 }
   0x5   :  { %p1300_p0 = scmp.ne.s32.totalorder %s44_s28, %s1299_s29  ;;  %p1305_p2 = scmp.lt.s32.totalorder %s1299_s29, %s1299_s29 }
   0x7   :  { %p1306_p3 = por %p1305_p2, %p1304_p1 }
   0x9   :  { %p1307_p4 = pnand %p1306_p3, %p1300_p0 }
   0xb   :  { %1310 = shalt.err (!%p1307_p4)
}
   0xc   :  { %s1378_s30 = smov 128   ;;  %s1379_s9 = smov 8  }
   0xd   :  { %49 = dma.hbm_to_vmem [thread:$0]  %s1652_s6, 256, %s44_s28, [#allocation6], %s1378_s30, %s1378_s30, %s1379_s9  }
   0xe   :  { %s1380_s12 = smov [#allocation2]  }
   0xf   :  { %s21_s13 = sshll.u32 %s1380_s12, 4  ;;  %s22_s13 = int_to_ptr.vmem [resolvable:$true] %s21_s13 }
  0x10   :  { %s1319_s14 = scalar_lea.vmem %s22_s13, 128  ;;  %p1324_p6 = scmp.lt.s32.totalorder %s22_s13, %s22_s13 }
  0x11   :  { %p1320_p5 = scmp.ne.s32.totalorder %s22_s13, %s1319_s14  ;;  %p1325_p7 = scmp.lt.s32.totalorder %s1319_s14, %s1319_s14 }
  0x13   :  { %p1326_p8 = por %p1325_p7, %p1324_p6 }
  0x15   :  { %p1327_p9 = pnand %p1326_p8, %p1320_p5 }
  0x17   :  { %1330 = shalt.err (!%p1327_p9)
}
  0x18   :  { %s1381_s15 = smov 64   ;;  %s1382_s16 = smov 4  }
  0x19   :  { %27 = dma.hbm_to_vmem [thread:$0]  %s1646_s0, 128, %s22_s13, [#allocation3], %s1381_s15, %s1381_s15, %s1382_s16  }
  0x1a   :  { %s1383_s6 = smov [#allocation7]  }
  0x1b   :  { %s55_s19 = sshll.u32 %s1383_s6, 4  ;;  %s56_s19 = int_to_ptr.vmem [resolvable:$true] %s55_s19 }
  0x1c   :  { %s1339_s20 = scalar_lea.vmem %s56_s19, 256  ;;  %p1344_p11 = scmp.lt.s32.totalorder %s56_s19, %s56_s19 }
  0x1d   :  { %p1340_p10 = scmp.ne.s32.totalorder %s56_s19, %s1339_s20  ;;  %p1345_p12 = scmp.lt.s32.totalorder %s1339_s20, %s1339_s20 }
  0x1f   :  { %p1346_p13 = por %p1345_p12, %p1344_p11 }
  0x21   :  { %p1347_p0 = pnand %p1346_p13, %p1340_p10 }
  0x23   :  { %1350 = shalt.err (!%p1347_p0)
}
  0x24   :  { %61 = dma.hbm_to_vmem [thread:$0]  %s1653_s7, 256, %s56_s19, [#allocation6], %s1378_s30, %s1378_s30, %s1379_s9  }
  0x25   :  { %1371 = dma.done.wait [#allocation3], 128  }
  0x26   :  { %1372 = vsyncadd [#allocation3], 4294967168 }
  0x27   :  { %1373 = dma.done.wait [#allocation6], 512  }
  0x28   :  { %1374 = vsyncadd [#allocation6], 4294966784  ;;  %v1058_v0 = vld [vmem:[#allocation2] sm:$0xff]   ;;  %vm78_vm0 = vcmask 261120   ;;  %v1233_v7 = vld [vmem:[%s1647_s1 + $0x8] sm:$0xff]   ;;  %v1384_v8 = vmov 0.0  }
  0x29   :  { %v1454_v1 = vunpack.c.l.bf16 %v1058_v0  ;;  %v1456_v2 = vunpack.c.h.bf16 %v1058_v0  ;;  %1091 = vmatprep.subr.bf16.mxu0 %v1384_v8  ;;  %vm1385_vm1 = vmmov 0   ;;  %v1234_v9 = vld [vmem:[%s1647_s1] sm:$0xff]   ;;  %1099 = vmatprep.subr.bf16.mxu1 %v1384_v8  ;;  %v162_v10 = vld [vmem:[#allocation5] sm:$0xff]  ;;  %s1386_s25 = smov 16   ;;  %s1387_s26 = smov 96   ;;  %v163_v11 = vld [vmem:[#allocation5 + $0x8] sm:$0xff] }
  0x2a   :  { %1095 = vmatprep.mubr.msk.bf16.mxu0 %vm1385_vm1, %v1384_v8  ;;  %1092 = vmatpush3.bf16.msra.mxu0 %v1233_v7  ;;  %s1388_s1 = smov 32   ;;  %v1029_v21 = vld [vmem:[%s1651_s5] ss:$0 sm:$0xff]  ;;  %s1389_s29 = smov 120   ;;  %vm261_vm2 = vcmask 64512   ;;  %vm447_vm3 = vcmask 130048  }
  0x2b   :  { %v76_v3 = vmul.f32 %v1454_v1, %v1454_v1  ;;  %v77_v4 = vmul.f32 %v1456_v2, %v1456_v2  ;;  %1093 = vmatprep.subr.bf16.mxu0 %v1384_v8  ;;  %1101 = vmatprep.mubr.msk.bf16.mxu1 %vm1385_vm1, %v1384_v8  ;;  %s1390_s30 = smov 112   ;;  %s1391_s10 = smov 104   ;;  %vm752_vm4 = vcmask 195584   ;;  %vm955_vm5 = vcmask 523264  }
  0x2c   :  { %194 = vrot.lane.b32.xlu1 %v162_v10, %s1386_s25  ;;  %s1392_s11 = smov 80   ;;  %vm1008_vm6 = vcmask 257024  }
  0x2d   :  { %v79_v5 = vsel %vm78_vm0, %v76_v3, 0.0  ;;  %v82_v6 = vsel %vm78_vm0, %v77_v4, 0.0 }
  0x2e   :  { %80 = vadd.xlane.f32.xlu0 %v79_v5  ;;  %1094 = vmatpush3.bf16.msra.mxu0 %v1234_v9 }
  0x2f   :  { %1105 = vmatprep.subr.bf16.mxu0 %v1384_v8 }
  0x30   :  { %196 = vrot.lane.b32.xlu1 %v163_v11, %s1386_s25 }
  0x32   :  { %83 = vadd.xlane.f32.xlu0 %v82_v6 }
  0x34   :  { %188 = vrot.lane.b32.xlu1 %v163_v11, %s1387_s26 }
  0x38   :  { %168 = vrot.lane.b32.xlu1 %v162_v10, %s1388_s1 }
  0x3c   :  { %170 = vrot.lane.b32.xlu1 %v163_v11, %s1388_s1 }
  0x48   :  { %186 = vrot.lane.b32.xlu0 %v162_v10, %s1387_s26 }
  0x9e   :  { %v195_v26 = vpop.permute.xlu1 %194 }
  0xa2   :  { %v197_v27 = vpop.permute.xlu1 %196 }
  0xa6   :  { %v189_v28 = vpop.permute.xlu1 %188 }
  0xaa   :  { %v169_v29 = vpop.permute.xlu1 %168 }
  0xae   :  { %v171_v33 = vpop.permute.xlu1 %170 }
  0xb7   :  { %v81_v12 = vpop.xlane.xlu0 %80 }
  0xb8   :  { %v86_v13 = vmul.f32 0.03125, %v81_v12 }
  0xba   :  { %v88_v14 = vadd.f32 1e-06, %v86_v13 }
  0xbb   :  { %v84_v15 = vpop.xlane.xlu0 %83 }
  0xbc   :  { %1243 = vrsqrt.f32 %v88_v14  ;;  %v87_v16 = vmul.f32 0.03125, %v84_v15 }
  0xbe   :  { %v89_v17 = vadd.f32 1e-06, %v87_v16 }
  0xbf   :  { %v187_v41 = vpop.permute.xlu0 %186 }
  0xc0   :  { %1245 = vrsqrt.f32 %v89_v17  ;;  %v256_v17 = vld [vmem:[#allocation7] sm:$0xff] }
  0xc9   :  { %v1244_v18 = vpop.eup %1243 }
  0xca   :  { %v92_v19 = vmul.f32 %v1244_v18, %v1454_v1 }
  0xcc   :  { %v99_v23 = vmul.f32 %v1029_v21, %v92_v19 }
  0xcd   :  { %v1246_v20 = vpop.eup %1245 }
  0xce   :  { %v93_v22 = vmul.f32 %v1246_v20, %v1456_v2 }
  0xd0   :  { %v100_v24 = vmul.f32 %v1029_v21, %v93_v22  ;;  %v257_v22 = vld [vmem:[#allocation7 + $0x8] sm:$0xff] }
  0xd2   :  { %v101_v25 = vpack.c.bf16 %v100_v24, %v99_v23 }
  0xd4   :  { %1096 = vmatmul.mubr.msk.bf16.vlgmr.msra.gmra.mxu0 %vm78_vm0, %v101_v25 }
  0xd5   :  { %1107 = vmatprep.mubr.msk.bf16.mxu0 %vm1385_vm1, %v1384_v8 }
 0x194   :  { %v1490_v30 = vpop.f32.mrf.mxu0 }
 0x195   :  { %v200_v31 = vmul.f32 %v195_v26, %v1490_v30  ;;  %v174_v40 = vmul.f32 %v169_v29, %v1490_v30  ;;  %v192_v43 = vmul.f32 %v187_v41, %v1490_v30  ;;  %v164_v52 = vmul.f32 %v162_v10, %v1490_v30 }
 0x196   :  { %v1097_v32 = vpop.f32.mrf.mxu0 }
 0x197   :  { %204 = vrot.lane.b32.xlu1 %v200_v31, %s1381_s15 }
 0x198   :  { %v1494_v34 = vpop.f32.mrf.mxu0 }
 0x199   :  { %v201_v35 = vmul.f32 %v197_v27, %v1494_v34  ;;  %v175_v36 = vmul.f32 %v171_v33, %v1494_v34  ;;  %v1213_v38 = vpack.i.bf16 %v1494_v34, %v1490_v30  ;;  %v254_v39 = vpack.c.bf16 %v1494_v34, %v1490_v30 }
 0x19a   :  { %v1098_v37 = vpop.f32.mrf.mxu0  ;;  %v193_v44 = vmul.f32 %v189_v28, %v1494_v34  ;;  %v165_v51 = vmul.f32 %v163_v11, %v1494_v34 }
 0x19b   :  { %206 = vrot.lane.b32.xlu1 %v201_v35, %s1381_s15  ;;  %180 = vrot.lane.b32.xlu0 %v175_v36, %s1381_s15 }
 0x19f   :  { %178 = vrot.lane.b32.xlu1 %v174_v40, %s1381_s15 }
 0x209   :  { %v205_v42 = vpop.permute.xlu1 %204 }
 0x20a   :  { %v210_v46 = vadd.f32 %v205_v42, %v192_v43 }
 0x20d   :  { %v207_v45 = vpop.permute.xlu1 %206  ;;  %v181_v48 = vpop.permute.xlu0 %180 }
 0x20e   :  { %v211_v47 = vadd.f32 %v207_v45, %v193_v44  ;;  %v185_v54 = vadd.f32 %v181_v48, %v165_v51 }
 0x210   :  { %v1193_v49 = vpack.i.bf16 %v211_v47, %v210_v46  ;;  %v244_v50 = vpack.c.bf16 %v211_v47, %v210_v46 }
 0x211   :  { %v179_v53 = vpop.permute.xlu1 %178 }
 0x212   :  { %v184_v55 = vadd.f32 %v179_v53, %v164_v52  ;;  %1194 = vrot.lane.b32.xlu1 %v1193_v49, %s1389_s29  ;;  %259 = vrot.lane.b32.xlu0 %v244_v50, %s1387_s26 }
 0x214   :  { %v1198_v56 = vpack.i.bf16 %v185_v54, %v184_v55  ;;  %v232_v57 = vpack.c.bf16 %v185_v54, %v184_v55 }
 0x216   :  { %1199 = vrot.lane.b32.xlu1 %v1198_v56, %s1389_s29 }
 0x21a   :  { %1204 = vrot.lane.b32.xlu1 %v1198_v56, %s1390_s30 }
 0x284   :  { %v1195_v58 = vpop.permute.xlu1 %1194  ;;  %v260_v59 = vpop.permute.xlu0 %259 }
 0x285   :  { %v1197_v60 = vunpack.i.h.bf16 %v1195_v58  ;;  %v1196_v61 = vunpack.i.l.bf16 %v1195_v58  ;;  %v266_v62 = vsel %vm261_vm2, %v260_v59, 0 }
 0x286   :  { %1100 = vmatpush3.bf16.xpose.msra.mxu1 %v266_v62  ;;  %1106 = vmatpush3.bf16.xpose.msra.mxu0 %v266_v62 }
 0x287   :  { %v245_v63 = vpack.c.bf16 %v1197_v60, %v1196_v61  ;;  %1111 = vmatprep.subr.bf16.mxu1 %v1384_v8  ;;  %1117 = vmatprep.subr.bf16.mxu0 %v1384_v8 }
 0x288   :  { %v1200_v0 = vpop.permute.xlu1 %1199 }
 0x289   :  { %v1202_v3 = vunpack.i.h.bf16 %v1200_v0  ;;  %v1201_v4 = vunpack.i.l.bf16 %v1200_v0  ;;  %354 = vrot.lane.b32.xlu0 %v245_v63, %s1387_s26 }
 0x28b   :  { %v233_v5 = vpack.c.bf16 %v1202_v3, %v1201_v4 }
 0x28c   :  { %v1205_v6 = vpop.permute.xlu1 %1204 }
 0x28d   :  { %1209 = vrot.lane.b32.xlu0 %v1198_v56, %s1391_s10  ;;  %1102 = vmatmul.mubr.msk.bf16.vlgmr.msra.gmra.mxu1 %vm261_vm2, %v232_v57  ;;  %v1207_v10 = vunpack.i.h.bf16 %v1205_v6  ;;  %v1206_v11 = vunpack.i.l.bf16 %v1205_v6 }
 0x28e   :  { %1108 = vmatmul.mubr.msk.bf16.vlgmr.msra.gmra.mxu0 %vm261_vm2, %v233_v5  ;;  %1113 = vmatprep.mubr.msk.bf16.mxu1 %vm1385_vm1, %v1384_v8 }
 0x28f   :  { %1119 = vmatprep.mubr.msk.bf16.mxu0 %vm1385_vm1, %v1384_v8  ;;  %v234_v15 = vpack.c.bf16 %v1207_v10, %v1206_v11 }
 0x2fb   :  { %v355_v7 = vpop.permute.xlu0 %354 }
 0x2fc   :  { %v360_v9 = vsel %vm261_vm2, %v355_v7, 0 }
 0x2fd   :  { %1112 = vmatpush3.bf16.xpose.msra.mxu1 %v360_v9  ;;  %1118 = vmatpush3.bf16.xpose.msra.mxu0 %v360_v9 }
 0x2fe   :  { %1123 = vmatprep.subr.bf16.mxu1 %v1384_v8  ;;  %1129 = vmatprep.subr.bf16.mxu0 %v1384_v8 }
 0x2ff   :  { %v1210_v12 = vpop.permute.xlu0 %1209 }
 0x300   :  { %v1212_v13 = vunpack.i.h.bf16 %v1210_v12  ;;  %v1211_v14 = vunpack.i.l.bf16 %v1210_v12 }
 0x302   :  { %v235_v16 = vpack.c.bf16 %v1212_v13, %v1211_v14 }
 0x304   :  { %1114 = vmatmul.mubr.msk.bf16.vlgmr.msra.gmra.mxu1 %vm261_vm2, %v234_v15  ;;  %1120 = vmatmul.mubr.msk.bf16.vlgmr.msra.gmra.mxu0 %vm261_vm2, %v235_v16 }
 0x305   :  { %1125 = vmatprep.mubr.msk.bf16.mxu1 %vm1385_vm1, %v1384_v8  ;;  %1131 = vmatprep.mubr.msk.bf16.mxu0 %vm1385_vm1, %v1384_v8 }
 0x34d   :  { %v302_v18 = vpop.f32.mrf.mxu1 }
 0x34e   :  { %v303_v19 = vadd.f32 %v302_v18, %v256_v17  ;;  %v346_v20 = vpop.f32.mrf.mxu0 }
 0x34f   :  { %v1103_v21 = vpop.f32.mrf.mxu1  ;;  %v347_v31 = vadd.f32 %v346_v20, %v256_v17 }
 0x350   :  { %v1109_v23 = vpop.f32.mrf.mxu0  ;;  %v448_v24 = vsel %vm447_vm3, %v303_v19, -inf }
 0x351   :  { %449 = vmax.xlane.f32.xlu1 %v448_v24  ;;  %v305_v25 = vpop.f32.mrf.mxu1  ;;  %v454_v36 = vsel %vm447_vm3, %v347_v31, -inf }
 0x352   :  { %v349_v26 = vpop.f32.mrf.mxu0  ;;  %v306_v27 = vadd.f32 %v305_v25, %v257_v22 }
 0x353   :  { %v350_v28 = vadd.f32 %v349_v26, %v257_v22  ;;  %v1104_v29 = vpop.f32.mrf.mxu1 }
 0x354   :  { %v1110_v32 = vpop.f32.mrf.mxu0  ;;  %v451_v33 = vsel %vm447_vm3, %v306_v27, -inf }
 0x355   :  { %v457_v35 = vsel %vm447_vm3, %v350_v28, -inf  ;;  %452 = vmax.xlane.f32.xlu0 %v451_v33 }
 0x356   :  { %458 = vmax.xlane.f32.xlu1 %v457_v35 }
 0x359   :  { %455 = vmax.xlane.f32.xlu0 %v454_v36 }
 0x3c4   :  { %v396_v37 = vpop.f32.mrf.mxu1  ;;  %v440_v40 = vpop.f32.mrf.mxu0 }
 0x3c5   :  { %v397_v41 = vadd.f32 %v396_v37, %v256_v17  ;;  %v441_v44 = vadd.f32 %v440_v40, %v256_v17 }
 0x3c6   :  { %v1115_v42 = vpop.f32.mrf.mxu1  ;;  %v1121_v43 = vpop.f32.mrf.mxu0 }
 0x3c7   :  { %v460_v45 = vsel %vm447_vm3, %v397_v41, -inf  ;;  %v466_v53 = vsel %vm447_vm3, %v441_v44, -inf }
 0x3c8   :  { %461 = vmax.xlane.f32.xlu0 %v460_v45  ;;  %v399_v46 = vpop.f32.mrf.mxu1  ;;  %v443_v47 = vpop.f32.mrf.mxu0 }
 0x3c9   :  { %v400_v48 = vadd.f32 %v399_v46, %v257_v22  ;;  %v444_v51 = vadd.f32 %v443_v47, %v257_v22 }
 0x3ca   :  { %v1116_v49 = vpop.f32.mrf.mxu1  ;;  %v1122_v50 = vpop.f32.mrf.mxu0 }
 0x3cb   :  { %v463_v52 = vsel %vm447_vm3, %v400_v48, -inf  ;;  %v469_v54 = vsel %vm447_vm3, %v444_v51, -inf }
 0x3cc   :  { %464 = vmax.xlane.f32.xlu1 %v463_v52  ;;  %467 = vmax.xlane.f32.xlu0 %v466_v53 }
 0x3d0   :  { %470 = vmax.xlane.f32.xlu1 %v469_v54 }
 0x3da   :  { %v450_v55 = vpop.xlane.xlu1 %449 }
 0x3db   :  { %v472_v56 = vsub.f32 %v303_v19, %v450_v55 }
 0x3dd   :  { %v480_v57 = vmul.f32 1.442695, %v472_v56 }
 0x3de   :  { %v453_v58 = vpop.xlane.xlu0 %452 }
 0x3df   :  { %1247 = vpow2.f32 %v480_v57  ;;  %v473_v59 = vsub.f32 %v306_v27, %v453_v58  ;;  %v459_v60 = vpop.xlane.xlu1 %458 }
 0x3e0   :  { %v475_v63 = vsub.f32 %v350_v28, %v459_v60 }
 0x3e1   :  { %v482_v0 = vmul.f32 1.442695, %v473_v59 }
 0x3e2   :  { %v456_v61 = vpop.xlane.xlu0 %455  ;;  %1214 = vrot.lane.b32.xlu0 %v1213_v38, %s1389_s29  ;;  %v486_v4 = vmul.f32 1.442695, %v475_v63 }
 0x3e3   :  { %v474_v62 = vsub.f32 %v347_v31, %v456_v61 }
 0x3e5   :  { %v484_v3 = vmul.f32 1.442695, %v474_v62 }
 0x3e7   :  { %1249 = vpow2.f32 %v484_v3 }
 0x3e8   :  { %1251 = vpow2.f32 %v482_v0 }
 0x3e9   :  { %1253 = vpow2.f32 %v486_v4 }
 0x3ec   :  { %v1544_v5 = vpop.eup %1247 }
 0x3ed   :  { %v496_v6 = vsel %vm447_vm3, %v1544_v5, 0.0 }
 0x3ee   :  { %497 = vadd.xlane.f32.xlu1 %v496_v6 }
 0x3f4   :  { %v1250_v7 = vpop.eup %1249 }
 0x3f5   :  { %v502_v9 = vsel %vm447_vm3, %v1250_v7, 0.0  ;;  %v1252_v10 = vpop.eup %1251 }
 0x3f6   :  { %503 = vadd.xlane.f32.xlu1 %v502_v9  ;;  %v499_v38 = vsel %vm447_vm3, %v1252_v10, 0.0  ;;  %v1254_v11 = vpop.eup %1253 }
 0x3f7   :  { %v505_v12 = vsel %vm447_vm3, %v1254_v11, 0.0 }
 0x3fa   :  { %500 = vadd.xlane.f32.xlu1 %v499_v38 }
 0x3fe   :  { %506 = vadd.xlane.f32.xlu1 %v505_v12 }
 0x451   :  { %v462_v13 = vpop.xlane.xlu0 %461 }
 0x452   :  { %v476_v14 = vsub.f32 %v397_v41, %v462_v13 }
 0x454   :  { %v488_v15 = vmul.f32 1.442695, %v476_v14 }
 0x455   :  { %v465_v16 = vpop.xlane.xlu1 %464  ;;  %v468_v17 = vpop.xlane.xlu0 %467 }
 0x456   :  { %1255 = vpow2.f32 %v488_v15  ;;  %v477_v18 = vsub.f32 %v400_v48, %v465_v16  ;;  %v478_v19 = vsub.f32 %v441_v44, %v468_v17  ;;  %v1235_v15 = vld [vmem:[%s1648_s2 + $0x8] sm:$0xff]  }
 0x458   :  { %v490_v20 = vmul.f32 1.442695, %v477_v18  ;;  %v492_v21 = vmul.f32 1.442695, %v478_v19 }
 0x459   :  { %v471_v28 = vpop.xlane.xlu1 %470  ;;  %v1215_v35 = vpop.permute.xlu0 %1214 }
 0x45a   :  { %1257 = vpow2.f32 %v490_v20  ;;  %v479_v29 = vsub.f32 %v444_v51, %v471_v28  ;;  %v1217_v36 = vunpack.i.h.bf16 %v1215_v35  ;;  %v1216_v37 = vunpack.i.l.bf16 %v1215_v35  ;;  %v1236_v20 = vld [vmem:[%s1648_s2] sm:$0xff]  }
 0x45b   :  { %1259 = vpow2.f32 %v492_v21 }
 0x45c   :  { %v494_v31 = vmul.f32 1.442695, %v479_v29  ;;  %v255_v40 = vpack.c.bf16 %v1217_v36, %v1216_v37 }
 0x45e   :  { %1261 = vpow2.f32 %v494_v31 }
 0x463   :  { %v1256_v22 = vpop.eup %1255 }
 0x464   :  { %v508_v23 = vsel %vm447_vm3, %v1256_v22, 0.0 }
 0x465   :  { %509 = vadd.xlane.f32.xlu1 %v508_v23 }
 0x467   :  { %v1258_v24 = vpop.eup %1257 }
 0x468   :  { %v1552_v25 = vpop.eup %1259  ;;  %v511_v26 = vsel %vm447_vm3, %v1258_v24, 0.0 }
 0x469   :  { %512 = vadd.xlane.f32.xlu0 %v511_v26  ;;  %v514_v27 = vsel %vm447_vm3, %v1552_v25, 0.0 }
 0x46a   :  { %515 = vadd.xlane.f32.xlu1 %v514_v27 }
 0x46b   :  { %v1262_v32 = vpop.eup %1261 }
 0x46c   :  { %v517_v33 = vsel %vm447_vm3, %v1262_v32, 0.0 }
 0x477   :  { %v498_v41 = vpop.xlane.xlu1 %497 }
 0x47b   :  { %541 = vrot.lane.b32.xlu1 %v254_v39, %s1392_s11 }
 0x47f   :  { %v504_v42 = vpop.xlane.xlu1 %503 }
 0x483   :  { %v501_v43 = vpop.xlane.xlu1 %500 }
 0x484   :  { %1263 = vrcp.f32 %v501_v43 }
 0x487   :  { %v507_v44 = vpop.xlane.xlu1 %506 }
 0x488   :  { %1265 = vrcp.f32 %v507_v44 }
 0x489   :  { %1267 = vrcp.f32 %v498_v41 }
 0x48a   :  { %1269 = vrcp.f32 %v504_v42 }
 0x491   :  { %v1264_v34 = vpop.eup %1263 }
 0x492   :  { %v529_v48 = vmul.f32 %v1264_v34, %v1252_v10 }
 0x495   :  { %v1266_v39 = vpop.eup %1265 }
 0x496   :  { %v1268_v45 = vpop.eup %1267  ;;  %v531_v49 = vmul.f32 %v1266_v39, %v1254_v11 }
 0x497   :  { %v1270_v47 = vpop.eup %1269  ;;  %v528_v51 = vmul.f32 %v1268_v45, %v1544_v5 }
 0x498   :  { %v530_v52 = vmul.f32 %v1270_v47, %v1250_v7 }
 0x499   :  { %v536_v53 = vpack.c.bf16 %v529_v48, %v528_v51 }
 0x49a   :  { %v537_v54 = vpack.c.bf16 %v531_v49, %v530_v52 }
 0x49f   :  { %518 = vadd.xlane.f32.xlu1 %v517_v33 }
 0x4b0   :  { %633 = vrot.lane.b32.xlu1 %v255_v40, %s1392_s11 }
 0x4ee   :  { %v510_v30 = vpop.xlane.xlu1 %509 }
 0x4f2   :  { %v513_v55 = vpop.xlane.xlu0 %512 }
 0x4f3   :  { %v516_v46 = vpop.xlane.xlu1 %515  ;;  %1271 = vrcp.f32 %v513_v55 }
 0x4f4   :  { %1273 = vrcp.f32 %v510_v30 }
 0x4f5   :  { %1275 = vrcp.f32 %v516_v46 }
 0x4f7   :  { %v542_v50 = vpop.permute.xlu1 %541 }
 0x4f8   :  { %1124 = vmatpush3.bf16.msra.mxu1 %v542_v50  ;;  %1130 = vmatpush3.bf16.msra.mxu0 %v542_v50 }
 0x4f9   :  { %1135 = vmatprep.subr.bf16.mxu1 %v1384_v8  ;;  %1141 = vmatprep.subr.bf16.mxu0 %v1384_v8 }
 0x4fb   :  { %1126 = vmatmul.mubr.msk.bf16.vlgmr.msra.gmra.mxu1 %vm447_vm3, %v536_v53  ;;  %1132 = vmatmul.mubr.msk.bf16.vlgmr.msra.gmra.mxu0 %vm447_vm3, %v537_v54 }
 0x4fc   :  { %1137 = vmatprep.mubr.msk.bf16.mxu1 %vm1385_vm1, %v1384_v8  ;;  %1143 = vmatprep.mubr.msk.bf16.mxu0 %vm1385_vm1, %v1384_v8 }
 0x500   :  { %v1272_v56 = vpop.eup %1271 }
 0x501   :  { %v1274_v58 = vpop.eup %1273  ;;  %v533_v59 = vmul.f32 %v1272_v56, %v1258_v24 }
 0x502   :  { %v532_v61 = vmul.f32 %v1274_v58, %v1256_v22  ;;  %v1276_v63 = vpop.eup %1275 }
 0x503   :  { %v534_v3 = vmul.f32 %v1276_v63, %v1552_v25  ;;  %v1044_v63 = vld [vmem:[%s1651_s5 + $0x1] ss:$0 sm:$0xff] }
 0x504   :  { %v538_v62 = vpack.c.bf16 %v533_v59, %v532_v61 }
 0x528   :  { %v519_v57 = vpop.xlane.xlu1 %518 }
 0x529   :  { %1277 = vrcp.f32 %v519_v57 }
 0x52c   :  { %v634_v60 = vpop.permute.xlu1 %633 }
 0x52d   :  { %1136 = vmatpush3.bf16.msra.mxu1 %v634_v60  ;;  %1142 = vmatpush3.bf16.msra.mxu0 %v634_v60 }
 0x52e   :  { %1147 = vmatprep.subr.bf16.mxu1 %v1384_v8  ;;  %1155 = vmatprep.subr.bf16.mxu0 %v1384_v8 }
 0x530   :  { %1138 = vmatmul.mubr.msk.bf16.vlgmr.msra.gmra.mxu1 %vm447_vm3, %v538_v62 }
 0x531   :  { %1151 = vmatprep.mubr.msk.bf16.mxu1 %vm1385_vm1, %v1384_v8  ;;  %1148 = vmatpush3.bf16.msra.mxu1 %v1235_v15 }
 0x532   :  { %1149 = vmatprep.subr.bf16.mxu1 %v1384_v8 }
 0x535   :  { %1150 = vmatpush3.bf16.msra.mxu1 %v1236_v20 }
 0x536   :  { %v1278_v0 = vpop.eup %1277  ;;  %1163 = vmatprep.subr.bf16.mxu1 %v1384_v8 }
 0x537   :  { %v535_v4 = vmul.f32 %v1278_v0, %v1262_v32 }
 0x539   :  { %v539_v5 = vpack.c.bf16 %v535_v4, %v534_v3 }
 0x53b   :  { %1144 = vmatmul.mubr.msk.bf16.vlgmr.msra.gmra.mxu0 %vm447_vm3, %v539_v5 }
 0x53c   :  { %1159 = vmatprep.mubr.msk.bf16.mxu0 %vm1385_vm1, %v1384_v8 }
 0x5bb   :  { %v581_v6 = vpop.f32.mrf.mxu1  ;;  %v625_v7 = vpop.f32.mrf.mxu0 }
 0x5bd   :  { %v1127_v9 = vpop.f32.mrf.mxu1  ;;  %v1133_v10 = vpop.f32.mrf.mxu0 }
 0x5be   :  { %v1241_v9 = vld [vmem:[%s1650_s4 + $0x8] sm:$0xff]   ;;  %v1242_v10 = vld [vmem:[%s1650_s4] sm:$0xff]  }
 0x5bf   :  { %v584_v38 = vpop.f32.mrf.mxu1  ;;  %v628_v11 = vpop.f32.mrf.mxu0 }
 0x5c0   :  { %v1218_v12 = vpack.i.bf16 %v628_v11, %v625_v7  ;;  %v1240_v7 = vld [vmem:[%s1650_s4 + $0x10] sm:$0xff]  }
 0x5c1   :  { %v1128_v13 = vpop.f32.mrf.mxu1  ;;  %v1134_v14 = vpop.f32.mrf.mxu0 }
 0x5c2   :  { %1219 = vrot.lane.b32.xlu1 %v1218_v12, %s1379_s9  ;;  %s1393_s9 = smov 24  }
 0x5f0   :  { %v673_v16 = vpop.f32.mrf.mxu1 }
 0x5f2   :  { %v1139_v17 = vpop.f32.mrf.mxu1 }
 0x5f4   :  { %v676_v18 = vpop.f32.mrf.mxu1 }
 0x5f5   :  { %v1223_v19 = vpack.i.bf16 %v676_v18, %v673_v16 }
 0x5f6   :  { %v1140_v21 = vpop.f32.mrf.mxu1 }
 0x5f7   :  { %1224 = vrot.lane.b32.xlu0 %v1223_v19, %s1386_s25 }
 0x5fb   :  { %v717_v22 = vpop.f32.mrf.mxu0 }
 0x5fd   :  { %v1145_v23 = vpop.f32.mrf.mxu0 }
 0x5ff   :  { %v720_v24 = vpop.f32.mrf.mxu0 }
 0x600   :  { %v1228_v25 = vpack.i.bf16 %v720_v24, %v717_v22 }
 0x601   :  { %v1146_v26 = vpop.f32.mrf.mxu0 }
 0x602   :  { %1229 = vrot.lane.b32.xlu1 %v1228_v25, %s1393_s9 }
 0x634   :  { %v1220_v27 = vpop.permute.xlu1 %1219 }
 0x635   :  { %v1222_v29 = vunpack.i.h.bf16 %v1220_v27  ;;  %v1221_v31 = vunpack.i.l.bf16 %v1220_v27 }
 0x637   :  { %v749_v36 = vsel %vm261_vm2, %v584_v38, %v1222_v29  ;;  %v748_v37 = vsel %vm261_vm2, %v581_v6, %v1221_v31  ;;  %v1239_v6 = vld [vmem:[%s1650_s4 + $0x18] sm:$0xff]   ;;  %s1394_s4 = smov [#allocation8]  }
 0x638   :  { %s1016_s26 = sshll.u32 %s1394_s4, 4  ;;  %s1017_s26 = int_to_ptr.vmem [resolvable:$true] %s1016_s26 }
 0x639   :  { %s1351_s1 = scalar_lea.vmem %s1017_s26, 128  ;;  %p1356_p2 = scmp.lt.s32.totalorder %s1017_s26, %s1017_s26 }
 0x63a   :  { %p1352_p1 = scmp.ne.s32.totalorder %s1017_s26, %s1351_s1  ;;  %p1357_p3 = scmp.lt.s32.totalorder %s1351_s1, %s1351_s1 }
 0x63c   :  { %p1358_p4 = por %p1357_p3, %p1356_p2 }
 0x63e   :  { %p1359_p5 = pnand %p1358_p4, %p1352_p1 }
 0x669   :  { %v1225_v28 = vpop.permute.xlu0 %1224 }
 0x66a   :  { %v1227_v32 = vunpack.i.h.bf16 %v1225_v28  ;;  %v1226_v33 = vunpack.i.l.bf16 %v1225_v28 }
 0x66c   :  { %v750_v42 = vsel %vm447_vm3, %v748_v37, %v1226_v33  ;;  %v751_v43 = vsel %vm447_vm3, %v749_v36, %v1227_v32 }
 0x674   :  { %v1230_v35 = vpop.permute.xlu1 %1229 }
 0x675   :  { %v1232_v40 = vunpack.i.h.bf16 %v1230_v35  ;;  %v1231_v41 = vunpack.i.l.bf16 %v1230_v35 }
 0x677   :  { %v754_v44 = vsel %vm752_vm4, %v751_v43, %v1232_v40  ;;  %v753_v30 = vsel %vm752_vm4, %v750_v42, %v1231_v41 }
 0x678   :  { %v755_v34 = vpack.c.bf16 %v754_v44, %v753_v30 }
 0x67a   :  { %1152 = vmatmul.mubr.msk.bf16.vlgmr.msra.gmra.mxu1 %vm78_vm0, %v755_v34 }
 0x67b   :  { %1171 = vmatprep.mubr.msk.bf16.mxu1 %vm1385_vm1, %v1384_v8  ;;  %1164 = vmatpush3.bf16.msra.mxu1 %v1239_v6 }
 0x67c   :  { %1165 = vmatprep.subr.bf16.mxu1 %v1384_v8 }
 0x67f   :  { %1166 = vmatpush3.bf16.msra.mxu1 %v1240_v7 }
 0x680   :  { %1167 = vmatprep.subr.bf16.mxu1 %v1384_v8 }
 0x683   :  { %1168 = vmatpush3.bf16.msra.mxu1 %v1241_v9 }
 0x684   :  { %1169 = vmatprep.subr.bf16.mxu1 %v1384_v8 }
 0x687   :  { %1170 = vmatpush3.bf16.msra.mxu1 %v1242_v10 }
 0x73a   :  { %v809_v39 = vpop.f32.mrf.mxu1 }
 0x73b   :  { %v1597_v45 = vadd.f32 %v1454_v1, %v809_v39  ;;  %v1237_v1 = vld [vmem:[%s1649_s3 + $0x8] sm:$0xff]  }
 0x73c   :  { %v1153_v46 = vpop.f32.mrf.mxu1  ;;  %1156 = vmatpush3.bf16.msra.mxu0 %v1237_v1 }
 0x73d   :  { %v816_v47 = vmul.f32 %v1597_v45, %v1597_v45  ;;  %1157 = vmatprep.subr.bf16.mxu0 %v1384_v8 }
 0x73e   :  { %v812_v48 = vpop.f32.mrf.mxu1 }
 0x73f   :  { %v1602_v49 = vadd.f32 %v1456_v2, %v812_v48  ;;  %v818_v50 = vsel %vm78_vm0, %v816_v47, 0.0  ;;  %v1238_v2 = vld [vmem:[%s1649_s3] sm:$0xff]  }
 0x740   :  { %819 = vadd.xlane.f32.xlu1 %v818_v50  ;;  %v1154_v51 = vpop.f32.mrf.mxu1  ;;  %1158 = vmatpush3.bf16.msra.mxu0 %v1238_v2 }
 0x741   :  { %v817_v52 = vmul.f32 %v1602_v49, %v1602_v49 }
 0x743   :  { %v821_v53 = vsel %vm78_vm0, %v817_v52, 0.0 }
 0x744   :  { %822 = vadd.xlane.f32.xlu0 %v821_v53 }
 0x7c9   :  { %v820_v54 = vpop.xlane.xlu1 %819 }
 0x7ca   :  { %v824_v55 = vmul.f32 0.03125, %v820_v54 }
 0x7cc   :  { %v826_v56 = vadd.f32 1e-06, %v824_v55 }
 0x7cd   :  { %v823_v57 = vpop.xlane.xlu0 %822 }
 0x7ce   :  { %1279 = vrsqrt.f32 %v826_v56  ;;  %v825_v58 = vmul.f32 0.03125, %v823_v57 }
 0x7d0   :  { %v827_v59 = vadd.f32 1e-06, %v825_v58 }
 0x7d2   :  { %1281 = vrsqrt.f32 %v827_v59 }
 0x7db   :  { %v1280_v60 = vpop.eup %1279 }
 0x7dc   :  { %v830_v61 = vmul.f32 %v1280_v60, %v1597_v45 }
 0x7de   :  { %v837_v3 = vmul.f32 %v1044_v63, %v830_v61 }
 0x7df   :  { %v1282_v62 = vpop.eup %1281 }
 0x7e0   :  { %v831_v0 = vmul.f32 %v1282_v62, %v1602_v49 }
 0x7e2   :  { %v838_v4 = vmul.f32 %v1044_v63, %v831_v0 }
 0x7e4   :  { %v839_v5 = vpack.c.bf16 %v838_v4, %v837_v3 }
 0x7e6   :  { %1160 = vmatmul.mubr.msk.bf16.vlgmr.msra.gmra.mxu0 %vm78_vm0, %v839_v5 }
 0x8a6   :  { %v893_v38 = vpop.f32.mrf.mxu0 }
 0x8a7   :  { %914 = vrot.lane.b32.xlu1 %v893_v38, %s1381_s15  ;;  %v900_v14 = vsub.f32 0.0, %v893_v38 }
 0x8a8   :  { %v1161_v11 = vpop.f32.mrf.mxu0 }
 0x8a9   :  { %v902_v16 = vmul.f32 1.442695, %v900_v14 }
 0x8aa   :  { %v896_v12 = vpop.f32.mrf.mxu0 }
 0x8ab   :  { %916 = vrot.lane.b32.xlu0 %v896_v12, %s1381_s15  ;;  %v901_v15 = vsub.f32 0.0, %v896_v12  ;;  %1283 = vpow2.f32 %v902_v16 }
 0x8ac   :  { %v1162_v13 = vpop.f32.mrf.mxu0 }
 0x8ad   :  { %v904_v17 = vmul.f32 1.442695, %v901_v15 }
 0x8af   :  { %1285 = vpow2.f32 %v904_v17 }
 0x8b8   :  { %v1284_v8 = vpop.eup %1283 }
 0x8b9   :  { %v906_v19 = vadd.f32 1.0, %v1284_v8 }
 0x8bb   :  { %1287 = vrcp.f32 %v906_v19 }
 0x8bc   :  { %v1286_v18 = vpop.eup %1285 }
 0x8bd   :  { %v907_v20 = vadd.f32 1.0, %v1286_v18 }
 0x8bf   :  { %1289 = vrcp.f32 %v907_v20 }
 0x8c8   :  { %v1288_v21 = vpop.eup %1287 }
 0x8c9   :  { %v909_v24 = vmul.f32 %v1288_v21, %v893_v38 }
 0x8cc   :  { %v1290_v22 = vpop.eup %1289 }
 0x8cd   :  { %v911_v25 = vmul.f32 %v1290_v22, %v896_v12 }
 0x919   :  { %v915_v23 = vpop.permute.xlu1 %914 }
 0x91a   :  { %v920_v27 = vmul.f32 %v915_v23, %v909_v24 }
 0x91d   :  { %v917_v26 = vpop.permute.xlu0 %916 }
 0x91e   :  { %v921_v28 = vmul.f32 %v917_v26, %v911_v25 }
 0x920   :  { %v922_v29 = vpack.c.bf16 %v921_v28, %v920_v27 }
 0x922   :  { %1172 = vmatmul.mubr.msk.bf16.vlgmr.msra.gmra.mxu1 %vm955_vm5, %v922_v29 }
 0x9e2   :  { %v993_v31 = vpop.f32.mrf.mxu1 }
 0x9e3   :  { %v994_v32 = vadd.f32 %v993_v31, %v1597_v45 }
 0x9e4   :  { %v1173_v33 = vpop.f32.mrf.mxu1 }
 0x9e5   :  { %v1055_v35 = vpack.c.bf16 %v994_v32, %v994_v32 }
 0x9e6   :  { %v996_v36 = vpop.f32.mrf.mxu1 }
 0x9e7   :  { %v997_v37 = vadd.f32 %v996_v36, %v1602_v49  ;;  %1009 = vst.msk [vmem:[#allocation8] sm:$0xf] %vm1008_vm6, %v1055_v35 }
 0x9e8   :  { %v1174_v40 = vpop.f32.mrf.mxu1 }
 0x9e9   :  { %v1056_v41 = vpack.c.bf16 %v997_v37, %v997_v37 }
 0x9eb   :  { %1010 = vst.msk [vmem:[#allocation8 + $0x4] sm:$0xf] %vm1008_vm6, %v1056_v41 }
 0x9ec   :  { %1362 = shalt.err (!%p1359_p5)
}
 0x9ed   :  { %1022 = dma.vmem_to_hbm [thread:$0]  %s1017_s26, 128, %s1654_s8, [#allocation4], %s1381_s15, %s1381_s15, %s1382_s16  }
 0x9ee   :  { %1375 = dma.done.wait [#allocation4], 128  }
 0x9ef   :  { %1376 = vsyncadd [#allocation4], 4294967168 }
 0x9f0   :  { %1026 = vsyncpa [#allocation3], 1 }
 0x9f1   :  { %1027 = vsyncpa [#allocation6], 1 }
 0x9f2   :  { %1028 = vsyncpa [#allocation4], 1 }

</bundles_post_ra>
